<compile_context>
chip_gen: v5e
topology: v5e:2x2
jax: 0.10.0
libtpu: 0.0.40
codegen_flags: <defaults>
</compile_context>

<pallas_src>
import functools

import jax
import jax.numpy as jnp
from jax import lax
from jax.experimental import pallas as pl
from jax.experimental.pallas import tpu as pltpu

_NEG_INF = -1e30


def _abmil_kernel(
    x_ref,                       # (1, TN, F)  streamed tile features (original dtype)
    we_ref, be_ref,              # embed:      (F, D) cdt, (1, D) f32
    wuv_ref, buv_ref,            # fused u|v:  (D, 2D) cdt, (1, 2D) f32
    ww_ref, bw_ref,              # scorer:     (1, D) cdt, (1, 1) f32   (1/T pre-folded)
    wc1_ref, wc2_ref, wc3_ref,   # classifier: (D, H1), (H1, H2), (H2, C) f32
    *rest,                       # [logits_ref, (attw_ref)], m_ref, l_ref, acc_ref
    n_valid: int,
    mask_tail_rows: bool,
    store_attw: bool,
):
    if store_attw:
        logits_ref, attw_ref, m_ref, l_ref, acc_ref = rest
    else:
        logits_ref, m_ref, l_ref, acc_ref = rest
        attw_ref = None

    nt = pl.program_id(1)
    tn = x_ref.shape[1]
    d = we_ref.shape[1]
    cdt = we_ref.dtype

    @pl.when(nt == 0)
    def _init():
        m_ref[...] = jnp.full_like(m_ref, _NEG_INF)
        l_ref[...] = jnp.zeros_like(l_ref)
        acc_ref[...] = jnp.zeros_like(acc_ref)

    # --- streamed block: cast to compute dtype in-kernel (no wrapper rewrite) ----
    x = x_ref[0].astype(cdt)                                              # (TN, F)
    if mask_tail_rows:
        # The last tile may overhang N; OOB block contents are unspecified, so zero
        # the invalid rows explicitly before they reach any matmul.
        row = lax.broadcasted_iota(jnp.int32, (tn, 1), 0) + nt * tn
        x = jnp.where(row < n_valid, x, jnp.zeros_like(x))

    # --- embedding MLP (single Linear, bias, no activation) ----------------------
    emb = jnp.dot(x, we_ref[...], preferred_element_type=jnp.float32) + be_ref[...]
    emb_c = emb.astype(cdt)                                               # matmul operand

    # --- gated attention: fused tanh/sigmoid projections (single (D,2D) matmul) --
    uv = jnp.dot(emb_c, wuv_ref[...], preferred_element_type=jnp.float32) + buv_ref[...]
    # gate computed in the compute dtype (bf16 on v6e/v7x; use compute_dtype=f32 on v5e)
    hg = jnp.tanh(uv[:, :d].astype(cdt)) * jax.nn.sigmoid(uv[:, d:].astype(cdt))

    # scorer kept lane-dense: (1, D) x (TN, D)^T -> (1, TN); temperature folded in
    s_row = jnp.einsum("kd,nd->kn", ww_ref[...], hg,
                       preferred_element_type=jnp.float32) + bw_ref[...]  # (1, TN)

    # mask padded / invalid tiles
    col = lax.broadcasted_iota(jnp.int32, (1, tn), 1) + nt * tn
    s_row = jnp.where(col < n_valid, s_row, _NEG_INF)

    if store_attw:
        # raw scores stashed directly into the resident output block (lane-dense row)
        attw_ref[0, pl.ds(nt, 1), :] = s_row

    # --- online softmax over the tile axis ---------------------------------------
    m_prev = m_ref[...]                                                   # (1, 1)
    m_new = jnp.maximum(m_prev, jnp.max(s_row, axis=-1, keepdims=True))
    alpha = jnp.exp(m_prev - m_new)
    p = jnp.exp(s_row - m_new)                                            # (1, TN)
    l_ref[...] = alpha * l_ref[...] + jnp.sum(p, axis=-1, keepdims=True)
    acc_ref[...] = alpha * acc_ref[...] + jnp.dot(
        p.astype(cdt), emb_c, preferred_element_type=jnp.float32)         # (1, D) via MXU
    m_ref[...] = m_new

    # --- finalize: normalize attention weights, aggregate, classify --------------
    @pl.when(nt == pl.num_programs(1) - 1)
    def _finalize():
        inv_l = pl.reciprocal(l_ref[...], approx=True)                    # (1, 1)
        if store_attw:
            attw_ref[0] = (jnp.exp(attw_ref[0] - m_ref[...]) * inv_l
                           ).astype(attw_ref.dtype)                       # normalize in place
        agg = acc_ref[...] * inv_l                                        # (1, D)
        z = jnp.maximum(jnp.dot(agg, wc1_ref[...], preferred_element_type=jnp.float32), 0.0)
        z = jnp.maximum(jnp.dot(z, wc2_ref[...], preferred_element_type=jnp.float32), 0.0)
        logits_ref[0] = jnp.dot(
            z, wc3_ref[...], preferred_element_type=jnp.float32).astype(logits_ref.dtype)
    # TODO(synk): dropout layers are identity in eval mode; the mask=None attention path
    # is the only one implemented (matches the module defaults).


def _round_up(x: int, m: int) -> int:
    return ((x + m - 1) // m) * m


def _vmem_capacity_bytes() -> int:
    """Per-TensorCore VMEM capacity; falls back to the v7x minimum if unavailable."""
    try:
        cap = getattr(pltpu.get_tpu_info(), "vmem_capacity_bytes", None)
        if cap:
            return int(cap)
    except Exception:
        pass
    return 64 * 2**20


def _pick_tile_n(n: int, f: int, d: int, x_itemsize: int, c_itemsize: int,
                 stream_budget_bytes: int) -> int:
    """Largest multiple-of-8 N-tile whose double-buffered streamed block plus the
    per-row in-kernel temporaries (emb/uv/hg/emb_c/cast-x) fit the stream budget."""
    per_row = (2 * f * x_itemsize          # double-buffered (TN, F) HBM stream
               + f * c_itemsize            # in-kernel cast of the block
               + 16 * d                    # emb (f32 D) + uv (f32 2D) + slack
               + 2 * d * c_itemsize)       # emb_c + hg in compute dtype
    tn = max(8, (stream_budget_bytes // max(per_row, 1)) // 8 * 8)
    tn = min(tn, 4096)
    tn = min(tn, _round_up(n, 8))
    return int(max(8, tn))


def abmil_forward(features, params, *, temperature: float = 1.0,
                  return_attention_weights: bool = False,
                  tile_n: int | None = None,
                  compute_dtype=jnp.bfloat16):
    """features: (B, N, F) in any float dtype (streamed as-is, cast in-kernel).
    Returns logits (B, C) [and attention weights (B, N, 1), f32]."""
    B, N, F = features.shape
    D = params["w_embed"].shape[1]
    C = params["w_cls3"].shape[1]

    cdt = jnp.dtype(compute_dtype)
    xi = jnp.dtype(features.dtype).itemsize
    ci = cdt.itemsize

    # generation-aware budgets: 128 MiB parts (v5e/v6e) vs 64 MiB per TC (v7x)
    vmem_cap = _vmem_capacity_bytes()
    if vmem_cap >= 96 * 2**20:
        stream_budget, vmem_ceiling = 24 * 2**20, 96 * 2**20
    else:
        stream_budget, vmem_ceiling = 10 * 2**20, 40 * 2**20

    if tile_n is None:
        TN = _pick_tile_n(N, F, D, xi, ci, stream_budget)
    else:
        TN = max(8, _round_up(int(tile_n), 8))
    NT = pl.cdiv(N, TN)
    mask_tail_rows = (N % TN) != 0

    inv_t = jnp.float32(1.0 / temperature)
    w_embed = params["w_embed"].astype(cdt)                                         # (F, D)
    b_embed = params["b_embed"].reshape(1, D).astype(jnp.float32)
    w_uv = jnp.concatenate([params["w_att_u"], params["w_att_v"]], axis=1).astype(cdt)   # (D, 2D)
    b_uv = jnp.concatenate([params["b_att_u"], params["b_att_v"]],
                           axis=1).reshape(1, 2 * D).astype(jnp.float32)
    w_w = (params["w_att_w"].reshape(1, D) * inv_t).astype(cdt)                     # 1/T folded
    b_w = (params["b_att_w"].reshape(1, 1) * inv_t).astype(jnp.float32)
    w_c1 = params["w_cls1"].astype(jnp.float32)
    w_c2 = params["w_cls2"].astype(jnp.float32)
    w_c3 = params["w_cls3"].astype(jnp.float32)

    weights = (w_embed, b_embed, w_uv, b_uv, w_w, b_w, w_c1, w_c2, w_c3)

    def _shared(shape):
        return pl.BlockSpec(shape, lambda b, nt: (0,) * len(shape))

    in_specs = [pl.BlockSpec((1, TN, F), lambda b, nt: (b, nt, 0))]
    in_specs += [_shared(w.shape) for w in weights]

    out_specs = [pl.BlockSpec((1, 1, C), lambda b, nt: (b, 0, 0))]        # logits (finalize)
    out_shape = [jax.ShapeDtypeStruct((B, 1, C), jnp.float32)]
    if return_attention_weights:
        out_specs.append(pl.BlockSpec((1, NT, TN), lambda b, nt: (b, 0, 0)))   # resident, lane-dense
        out_shape.append(jax.ShapeDtypeStruct((B, NT, TN), jnp.float32))

    scratch = [
        pltpu.VMEM((1, 1), jnp.float32),     # running max
        pltpu.VMEM((1, 1), jnp.float32),     # running sum(exp)
        pltpu.VMEM((1, D), jnp.float32),     # running weighted-embedding sum
    ]

    # Explicit VMEM budget: streamed block (double-buffered) + per-step temporaries +
    # weights (double-buffered) + scratch + resident outputs, with 2x margin, clamped to
    # [32 MiB, generation ceiling].
    est = (2 * TN * F * xi
           + TN * (F * ci + 16 * D + 2 * D * ci)
           + 2 * sum(int(w.size) * w.dtype.itemsize for w in weights)
           + 4 * (D + 4)
           + 2 * 4 * C)
    if return_attention_weights:
        est += 2 * NT * TN * 4
    vmem_limit = int(min(max(2 * est, 32 * 2**20), vmem_ceiling))

    kernel = functools.partial(
        _abmil_kernel,
        n_valid=N,
        mask_tail_rows=mask_tail_rows,
        store_attw=return_attention_weights,
    )

    outs = pl.pallas_call(
        kernel,
        grid=(B, NT),
        in_specs=in_specs,
        out_specs=out_specs,
        out_shape=out_shape,
        scratch_shapes=scratch,
        compiler_params=pltpu.CompilerParams(
            dimension_semantics=("parallel", "arbitrary"),
            vmem_limit_bytes=vmem_limit,
        ),
    )(features, *weights)

    if return_attention_weights:
        logits3, attw = outs
        logits = logits3.reshape(B, C)
        attention_weights = attw.reshape(B, NT * TN)[:, :N].reshape(B, N, 1)
        return logits, attention_weights
    (logits3,) = outs
    return logits3.reshape(B, C)


def abmil_reference(features, params, temperature: float = 1.0):
    """Plain-JAX (f32) reference of the same forward pass (for verification)."""
    emb = jnp.einsum("bnf,fd->bnd", features, params["w_embed"]) + params["b_embed"]
    h = jnp.tanh(jnp.einsum("bnd,de->bne", emb, params["w_att_u"]) + params["b_att_u"])
    g = jax.nn.sigmoid(jnp.einsum("bnd,de->bne", emb, params["w_att_v"]) + params["b_att_v"])
    att = (jnp.einsum("bnd,dk->bnk", h * g, params["w_att_w"]) + params["b_att_w"]) / temperature
    attw = jax.nn.softmax(att, axis=1)
    agg = jnp.einsum("bnk,bnd->bd", attw, emb)
    z = jax.nn.relu(agg @ params["w_cls1"])
    z = jax.nn.relu(z @ params["w_cls2"])
    return z @ params["w_cls3"], attw


if __name__ == "__main__":
    # small shapes consistent with the module: features (batch, n_tiles, in_features)
    B, N, F = 2, 24, 32
    D, H1, H2, C = 128, 128, 64, 1        # attention_dimension=128, classifier_hidden=[128,64]
    temperature = 1.5
    TN = 16                               # -> 2 N-tiles; ragged tail (rows 24..31) masked in-kernel

    key = jax.random.PRNGKey(0)
    keys = jax.random.split(key, 12)

    def _lin(k, fan_in, shape):
        bound = 1.0 / (fan_in ** 0.5)     # PyTorch nn.Linear default init range
        return jax.random.uniform(k, shape, jnp.float32, -bound, bound)

    params = {
        "w_embed": _lin(keys[0], F, (F, D)),
        "b_embed": _lin(keys[1], F, (1, D)),
        "w_att_u": _lin(keys[2], D, (D, D)),
        "b_att_u": _lin(keys[3], D, (1, D)),
        "w_att_v": _lin(keys[4], D, (D, D)),
        "b_att_v": _lin(keys[5], D, (1, D)),
        "w_att_w": _lin(keys[6], D, (D, 1)),
        "b_att_w": _lin(keys[7], D, (1, 1)),
        "w_cls1":  _lin(keys[8], D, (D, H1)),
        "w_cls2":  _lin(keys[9], H1, (H1, H2)),
        "w_cls3":  _lin(keys[10], H2, (H2, C)),
    }
    features = jax.random.normal(keys[11], (B, N, F), jnp.float32)

    ref_logits, ref_attw = abmil_reference(features, params, temperature)

    # f32 compute path with attention weights: tight check (exercises ragged tail masking)
    logits, attw = abmil_forward(features, params, temperature=temperature,
                                 return_attention_weights=True,
                                 tile_n=TN, compute_dtype=jnp.float32)
    jax.block_until_ready((logits, attw))
    assert logits.shape == (B, C) and attw.shape == (B, N, 1)
    assert jnp.allclose(logits, ref_logits, atol=5e-3, rtol=5e-3), "f32 logits mismatch"
    assert jnp.allclose(attw, ref_attw, atol=5e-3, rtol=5e-3), "f32 attention-weight mismatch"

    # f32 compute path without attention weights (leaner variant: no score storage/writeback)
    logits_na = abmil_forward(features, params, temperature=temperature,
                              return_attention_weights=False,
                              tile_n=TN, compute_dtype=jnp.float32)
    jax.block_until_ready(logits_na)
    assert jnp.allclose(logits_na, ref_logits, atol=5e-3, rtol=5e-3), "f32 (no-attw) logits mismatch"

    # bf16 matmul/gate path (f32 accumulation): loose check
    logits_bf, attw_bf = abmil_forward(features, params, temperature=temperature,
                                       return_attention_weights=True,
                                       tile_n=TN, compute_dtype=jnp.bfloat16)
    jax.block_until_ready((logits_bf, attw_bf))
    assert jnp.allclose(logits_bf, ref_logits, atol=1e-1, rtol=1e-1), "bf16 logits mismatch"
    assert jnp.allclose(attw_bf, ref_attw, atol=5e-2, rtol=1e-1), "bf16 attention-weight mismatch"

    print("KERNEL_OK")
</pallas_src>

<mosaic_0001>
module attributes {stable_mosaic.version = 11 : i64} {
  func.func @_abmil_kernel(%arg0: i32, %arg1: i32, %arg2: memref<1x16x32xf32, #tpu.memory_space<vmem>>, %arg3: memref<32x128xf32, #tpu.memory_space<vmem>>, %arg4: memref<1x128xf32, #tpu.memory_space<vmem>>, %arg5: memref<128x256xf32, #tpu.memory_space<vmem>>, %arg6: memref<1x256xf32, #tpu.memory_space<vmem>>, %arg7: memref<1x128xf32, #tpu.memory_space<vmem>>, %arg8: memref<1x1xf32, #tpu.memory_space<vmem>>, %arg9: memref<128x128xf32, #tpu.memory_space<vmem>>, %arg10: memref<128x64xf32, #tpu.memory_space<vmem>>, %arg11: memref<64x1xf32, #tpu.memory_space<vmem>>, %arg12: memref<1x1x1xf32, #tpu.memory_space<vmem>>, %arg13: memref<1x2x16xf32, #tpu.memory_space<vmem>>, %arg14: memref<1x1xf32, #tpu.memory_space<vmem>>, %arg15: memref<1x1xf32, #tpu.memory_space<vmem>>, %arg16: memref<1x128xf32, #tpu.memory_space<vmem>>) attributes {dimension_semantics = [#tpu.dimension_semantics<parallel>, #tpu.dimension_semantics<arbitrary>], iteration_bounds = array<i64: 2, 2>, scalar_prefetch = 0 : i64, scratch_operands = 3 : i64, tpu.core_type = #tpu.core_type<tc>, window_params = [{transform_indices = @transform_0, window_bounds = array<i64: 1, 16, 32>}, {pipeline_mode = #tpu.pipeline_mode<synchronous>, transform_indices = @transform_1, window_bounds = array<i64: 32, 128>}, {pipeline_mode = #tpu.pipeline_mode<synchronous>, transform_indices = @transform_2, window_bounds = array<i64: 1, 128>}, {pipeline_mode = #tpu.pipeline_mode<synchronous>, transform_indices = @transform_3, window_bounds = array<i64: 128, 256>}, {pipeline_mode = #tpu.pipeline_mode<synchronous>, transform_indices = @transform_4, window_bounds = array<i64: 1, 256>}, {pipeline_mode = #tpu.pipeline_mode<synchronous>, transform_indices = @transform_5, window_bounds = array<i64: 1, 128>}, {pipeline_mode = #tpu.pipeline_mode<synchronous>, transform_indices = @transform_6, window_bounds = array<i64: 1, 1>}, {pipeline_mode = #tpu.pipeline_mode<synchronous>, transform_indices = @transform_7, window_bounds = array<i64: 128, 128>}, {pipeline_mode = #tpu.pipeline_mode<synchronous>, transform_indices = @transform_8, window_bounds = array<i64: 128, 64>}, {pipeline_mode = #tpu.pipeline_mode<synchronous>, transform_indices = @transform_9, window_bounds = array<i64: 64, 1>}, {transform_indices = @transform_10, window_bounds = array<i64: 1, 1, 1>}, {transform_indices = @transform_11, window_bounds = array<i64: 1, 2, 16>}]} {
    %c0_i32 = arith.constant 0 : i32
    %0 = arith.cmpi eq, %arg1, %c0_i32 : i32
    %1 = arith.extui %0 : i1 to i32
    %c0_i32_0 = arith.constant 0 : i32
    %2 = arith.cmpi ne, %1, %c0_i32_0 : i32
    scf.if %2 {
      %cst_40 = arith.constant -1.000000e+30 : f32
      %76 = vector.broadcast %cst_40 : f32 to vector<1x1xf32>
      %c0_41 = arith.constant 0 : index
      %c0_42 = arith.constant 0 : index
      %77 = vector.load %arg14[%c0_41, %c0_42] : memref<1x1xf32, #tpu.memory_space<vmem>>, vector<1x1xf32>
      tpu.vector_store %arg14[%c0_41, %c0_42], %76 {strides = array<i32>} : memref<1x1xf32, #tpu.memory_space<vmem>>, vector<1x1xf32>,
      %cst_43 = arith.constant 0.000000e+00 : f32
      %78 = vector.broadcast %cst_43 : f32 to vector<1x1xf32>
      %c0_44 = arith.constant 0 : index
      %c0_45 = arith.constant 0 : index
      %79 = vector.load %arg15[%c0_44, %c0_45] : memref<1x1xf32, #tpu.memory_space<vmem>>, vector<1x1xf32>
      tpu.vector_store %arg15[%c0_44, %c0_45], %78 {strides = array<i32>} : memref<1x1xf32, #tpu.memory_space<vmem>>, vector<1x1xf32>,
      %cst_46 = arith.constant 0.000000e+00 : f32
      %80 = vector.broadcast %cst_46 : f32 to vector<1x128xf32>
      %c0_47 = arith.constant 0 : index
      %c0_48 = arith.constant 0 : index
      %81 = vector.load %arg16[%c0_47, %c0_48] : memref<1x128xf32, #tpu.memory_space<vmem>>, vector<1x128xf32>
      tpu.vector_store %arg16[%c0_47, %c0_48], %80 {strides = array<i32>} : memref<1x128xf32, #tpu.memory_space<vmem>>, vector<1x128xf32>,
    } else {
    }
    %c0 = arith.constant 0 : index
    %c0_1 = arith.constant 0 : index
    %c0_2 = arith.constant 0 : index
    %3 = vector.load %arg2[%c0, %c0_1, %c0_2] : memref<1x16x32xf32, #tpu.memory_space<vmem>>, vector<1x16x32xf32>
    %4 = vector.shape_cast %3 : vector<1x16x32xf32> to vector<16x32xf32>
    %5 = tpu.iota {dimensions = array<i32: 0>} : vector<16x1xi32>
    %c16_i32 = arith.constant 16 : i32
    %6 = arith.muli %arg1, %c16_i32 : i32
    %7 = vector.broadcast %6 : i32 to vector<16x1xi32>
    %8 = arith.addi %5, %7 : vector<16x1xi32>
    %c24_i32 = arith.constant 24 : i32
    %9 = vector.broadcast %c24_i32 : i32 to vector<16x1xi32>
    %10 = arith.cmpi slt, %8, %9 : vector<16x1xi32>
    %cst = arith.constant 0.000000e+00 : f32
    %11 = vector.broadcast %cst : f32 to vector<16x32xf32>
    %12 = vector.shape_cast %10 : vector<16x1xi1> to vector<16x1xi1>
    %13 = vector.broadcast %12 : vector<16x1xi1> to vector<16x32xi1>
    %14 = arith.select %13, %4, %11 : vector<16x32xi1>, vector<16x32xf32>
    %c0_3 = arith.constant 0 : index
    %c0_4 = arith.constant 0 : index
    %15 = vector.load %arg3[%c0_3, %c0_4] : memref<32x128xf32, #tpu.memory_space<vmem>>, vector<32x128xf32>
    %cst_5 = arith.constant dense<0.000000e+00> : vector<16x128xf32>
    %16 = tpu.matmul %14, %15, %cst_5 {dimension_numbers = #tpu.dot_dimension_numbers<[1], [0], [0], [1], [0, 0, 1, 1], [], []>} : vector<16x32xf32>, vector<32x128xf32>, vector<16x128xf32> -> vector<16x128xf32>
    %c0_6 = arith.constant 0 : index
    %c0_7 = arith.constant 0 : index
    %17 = vector.load %arg4[%c0_6, %c0_7] : memref<1x128xf32, #tpu.memory_space<vmem>>, vector<1x128xf32>
    %18 = vector.broadcast %17 : vector<1x128xf32> to vector<16x128xf32>
    %19 = arith.addf %16, %18 : vector<16x128xf32>
    %c0_8 = arith.constant 0 : index
    %c0_9 = arith.constant 0 : index
    %20 = vector.load %arg5[%c0_8, %c0_9] : memref<128x256xf32, #tpu.memory_space<vmem>>, vector<128x256xf32>
    %cst_10 = arith.constant dense<0.000000e+00> : vector<16x256xf32>
    %21 = tpu.matmul %19, %20, %cst_10 {dimension_numbers = #tpu.dot_dimension_numbers<[1], [0], [0], [1], [0, 0, 1, 1], [], []>} : vector<16x128xf32>, vector<128x256xf32>, vector<16x256xf32> -> vector<16x256xf32>
    %c0_11 = arith.constant 0 : index
    %c0_12 = arith.constant 0 : index
    %22 = vector.load %arg6[%c0_11, %c0_12] : memref<1x256xf32, #tpu.memory_space<vmem>>, vector<1x256xf32>
    %23 = vector.broadcast %22 : vector<1x256xf32> to vector<16x256xf32>
    %24 = arith.addf %21, %23 : vector<16x256xf32>
    %25 = vector.extract_strided_slice %24 {offsets = [0, 0], sizes = [16, 128], strides = [1, 1]} : vector<16x256xf32> to vector<16x128xf32>
    %26 = math.tanh %25 : vector<16x128xf32>
    %27 = vector.extract_strided_slice %24 {offsets = [0, 128], sizes = [16, 128], strides = [1, 1]} : vector<16x256xf32> to vector<16x128xf32>
    %28 = arith.negf %27 : vector<16x128xf32>
    %29 = math.exp %28 : vector<16x128xf32>
    %cst_13 = arith.constant 1.000000e+00 : f32
    %30 = vector.broadcast %cst_13 : f32 to vector<16x128xf32>
    %31 = arith.addf %30, %29 : vector<16x128xf32>
    %32 = arith.divf %30, %31 : vector<16x128xf32>
    %33 = arith.mulf %26, %32 : vector<16x128xf32>
    %c0_14 = arith.constant 0 : index
    %c0_15 = arith.constant 0 : index
    %34 = vector.load %arg7[%c0_14, %c0_15] : memref<1x128xf32, #tpu.memory_space<vmem>>, vector<1x128xf32>
    "tpu.trace_start"() <{level = 10 : i32, message = "kd,nd->kn"}> : () -> ()
    %cst_16 = arith.constant dense<0.000000e+00> : vector<1x16xf32>
    %35 = tpu.matmul %34, %33, %cst_16 {dimension_numbers = #tpu.dot_dimension_numbers<[1], [1], [0], [0], [0, 0, 1, 0], [], []>} : vector<1x128xf32>, vector<16x128xf32>, vector<1x16xf32> -> vector<1x16xf32>
    "tpu.trace_stop"() : () -> ()
    %c0_17 = arith.constant 0 : index
    %c0_18 = arith.constant 0 : index
    %36 = vector.load %arg8[%c0_17, %c0_18] : memref<1x1xf32, #tpu.memory_space<vmem>>, vector<1x1xf32>
    %37 = vector.broadcast %36 : vector<1x1xf32> to vector<1x16xf32>
    %38 = arith.addf %35, %37 : vector<1x16xf32>
    %39 = tpu.iota {dimensions = array<i32: 1>} : vector<1x16xi32>
    %c16_i32_19 = arith.constant 16 : i32
    %40 = arith.muli %arg1, %c16_i32_19 : i32
    %41 = vector.broadcast %40 : i32 to vector<1x16xi32>
    %42 = arith.addi %39, %41 : vector<1x16xi32>
    %c24_i32_20 = arith.constant 24 : i32
    %43 = vector.broadcast %c24_i32_20 : i32 to vector<1x16xi32>
    %44 = arith.cmpi slt, %42, %43 : vector<1x16xi32>
    %cst_21 = arith.constant -1.000000e+30 : f32
    %45 = vector.broadcast %cst_21 : f32 to vector<1x16xf32>
    %46 = arith.select %44, %38, %45 : vector<1x16xi1>, vector<1x16xf32>
    %c0_22 = arith.constant 0 : index
    %47 = arith.index_cast %arg1 : i32 to index
    %c0_23 = arith.constant 0 : index
    %48 = vector.load %arg13[%c0_22, %47, %c0_23] : memref<1x2x16xf32, #tpu.memory_space<vmem>>, vector<1x1x16xf32>
    %49 = vector.shape_cast %48 : vector<1x1x16xf32> to vector<1x16xf32>
    %50 = vector.shape_cast %46 : vector<1x16xf32> to vector<1x1x16xf32>
    tpu.vector_store %arg13[%c0_22, %47, %c0_23], %50 {strides = array<i32>} : memref<1x2x16xf32, #tpu.memory_space<vmem>>, vector<1x1x16xf32>,
    %c0_24 = arith.constant 0 : index
    %c0_25 = arith.constant 0 : index
    %51 = vector.load %arg14[%c0_24, %c0_25] : memref<1x1xf32, #tpu.memory_space<vmem>>, vector<1x1xf32>
    %cst_26 = arith.constant dense<0xFF800000> : vector<1xf32>
    %52 = vector.multi_reduction <maximumf>, %46, %cst_26 [1] : vector<1x16xf32> to vector<1xf32>
    %53 = vector.shape_cast %52 : vector<1xf32> to vector<1x1xf32>
    %54 = arith.maximumf %51, %53 : vector<1x1xf32>
    %55 = arith.subf %51, %54 : vector<1x1xf32>
    %56 = math.exp %55 : vector<1x1xf32>
    %57 = vector.broadcast %54 : vector<1x1xf32> to vector<1x16xf32>
    %58 = arith.subf %46, %57 : vector<1x16xf32>
    %59 = math.exp %58 : vector<1x16xf32>
    %c0_27 = arith.constant 0 : index
    %c0_28 = arith.constant 0 : index
    %60 = vector.load %arg15[%c0_27, %c0_28] : memref<1x1xf32, #tpu.memory_space<vmem>>, vector<1x1xf32>
    %61 = arith.mulf %56, %60 : vector<1x1xf32>
    %cst_29 = arith.constant dense<0.000000e+00> : vector<1xf32>
    %62 = vector.multi_reduction <add>, %59, %cst_29 [1] : vector<1x16xf32> to vector<1xf32>
    %63 = vector.shape_cast %62 : vector<1xf32> to vector<1x1xf32>
    %64 = arith.addf %61, %63 : vector<1x1xf32>
    %c0_30 = arith.constant 0 : index
    %c0_31 = arith.constant 0 : index
    %65 = vector.load %arg15[%c0_30, %c0_31] : memref<1x1xf32, #tpu.memory_space<vmem>>, vector<1x1xf32>
    tpu.vector_store %arg15[%c0_30, %c0_31], %64 {strides = array<i32>} : memref<1x1xf32, #tpu.memory_space<vmem>>, vector<1x1xf32>,
    %c0_32 = arith.constant 0 : index
    %c0_33 = arith.constant 0 : index
    %66 = vector.load %arg16[%c0_32, %c0_33] : memref<1x128xf32, #tpu.memory_space<vmem>>, vector<1x128xf32>
    %67 = vector.broadcast %56 : vector<1x1xf32> to vector<1x128xf32>
    %68 = arith.mulf %67, %66 : vector<1x128xf32>
    %cst_34 = arith.constant dense<0.000000e+00> : vector<1x128xf32>
    %69 = tpu.matmul %59, %19, %cst_34 {dimension_numbers = #tpu.dot_dimension_numbers<[1], [0], [0], [1], [0, 0, 1, 1], [], []>} : vector<1x16xf32>, vector<16x128xf32>, vector<1x128xf32> -> vector<1x128xf32>
    %70 = arith.addf %68, %69 : vector<1x128xf32>
    %c0_35 = arith.constant 0 : index
    %c0_36 = arith.constant 0 : index
    %71 = vector.load %arg16[%c0_35, %c0_36] : memref<1x128xf32, #tpu.memory_space<vmem>>, vector<1x128xf32>
    tpu.vector_store %arg16[%c0_35, %c0_36], %70 {strides = array<i32>} : memref<1x128xf32, #tpu.memory_space<vmem>>, vector<1x128xf32>,
    %c0_37 = arith.constant 0 : index
    %c0_38 = arith.constant 0 : index
    %72 = vector.load %arg14[%c0_37, %c0_38] : memref<1x1xf32, #tpu.memory_space<vmem>>, vector<1x1xf32>
    tpu.vector_store %arg14[%c0_37, %c0_38], %54 {strides = array<i32>} : memref<1x1xf32, #tpu.memory_space<vmem>>, vector<1x1xf32>,
    %c1_i32 = arith.constant 1 : i32
    %73 = arith.cmpi eq, %arg1, %c1_i32 : i32
    %74 = arith.extui %73 : i1 to i32
    %c0_i32_39 = arith.constant 0 : i32
    %75 = arith.cmpi ne, %74, %c0_i32_39 : i32
    scf.if %75 {
      %c0_40 = arith.constant 0 : index
      %c0_41 = arith.constant 0 : index
      %76 = vector.load %arg15[%c0_40, %c0_41] : memref<1x1xf32, #tpu.memory_space<vmem>>, vector<1x1xf32>
      %77 = tpu.reciprocal %76 {approx = true} : vector<1x1xf32> -> vector<1x1xf32>
      %c0_42 = arith.constant 0 : index
      %c0_43 = arith.constant 0 : index
      %c0_44 = arith.constant 0 : index
      %78 = vector.load %arg13[%c0_42, %c0_43, %c0_44] : memref<1x2x16xf32, #tpu.memory_space<vmem>>, vector<1x2x16xf32>
      %79 = vector.shape_cast %78 : vector<1x2x16xf32> to vector<2x16xf32>
      %c0_45 = arith.constant 0 : index
      %c0_46 = arith.constant 0 : index
      %80 = vector.load %arg14[%c0_45, %c0_46] : memref<1x1xf32, #tpu.memory_space<vmem>>, vector<1x1xf32>
      %81 = vector.broadcast %80 : vector<1x1xf32> to vector<2x16xf32>
      %82 = arith.subf %79, %81 : vector<2x16xf32>
      %83 = math.exp %82 : vector<2x16xf32>
      %84 = vector.broadcast %77 : vector<1x1xf32> to vector<2x16xf32>
      %85 = arith.mulf %83, %84 : vector<2x16xf32>
      %c0_47 = arith.constant 0 : index
      %c0_48 = arith.constant 0 : index
      %c0_49 = arith.constant 0 : index
      %86 = vector.load %arg13[%c0_47, %c0_48, %c0_49] : memref<1x2x16xf32, #tpu.memory_space<vmem>>, vector<1x2x16xf32>
      %87 = vector.shape_cast %86 : vector<1x2x16xf32> to vector<2x16xf32>
      %88 = vector.shape_cast %85 : vector<2x16xf32> to vector<1x2x16xf32>
      tpu.vector_store %arg13[%c0_47, %c0_48, %c0_49], %88 {strides = array<i32>} : memref<1x2x16xf32, #tpu.memory_space<vmem>>, vector<1x2x16xf32>,
      %c0_50 = arith.constant 0 : index
      %c0_51 = arith.constant 0 : index
      %89 = vector.load %arg16[%c0_50, %c0_51] : memref<1x128xf32, #tpu.memory_space<vmem>>, vector<1x128xf32>
      %90 = vector.broadcast %77 : vector<1x1xf32> to vector<1x128xf32>
      %91 = arith.mulf %89, %90 : vector<1x128xf32>
      %c0_52 = arith.constant 0 : index
      %c0_53 = arith.constant 0 : index
      %92 = vector.load %arg9[%c0_52, %c0_53] : memref<128x128xf32, #tpu.memory_space<vmem>>, vector<128x128xf32>
      %cst_54 = arith.constant dense<0.000000e+00> : vector<1x128xf32>
      %93 = tpu.matmul %91, %92, %cst_54 {dimension_numbers = #tpu.dot_dimension_numbers<[1], [0], [0], [1], [0, 0, 1, 1], [], []>} : vector<1x128xf32>, vector<128x128xf32>, vector<1x128xf32> -> vector<1x128xf32>
      %cst_55 = arith.constant 0.000000e+00 : f32
      %94 = vector.broadcast %cst_55 : f32 to vector<1x128xf32>
      %95 = arith.maximumf %93, %94 : vector<1x128xf32>
      %c0_56 = arith.constant 0 : index
      %c0_57 = arith.constant 0 : index
      %96 = vector.load %arg10[%c0_56, %c0_57] : memref<128x64xf32, #tpu.memory_space<vmem>>, vector<128x64xf32>
      %cst_58 = arith.constant dense<0.000000e+00> : vector<1x64xf32>
      %97 = tpu.matmul %95, %96, %cst_58 {dimension_numbers = #tpu.dot_dimension_numbers<[1], [0], [0], [1], [0, 0, 1, 1], [], []>} : vector<1x128xf32>, vector<128x64xf32>, vector<1x64xf32> -> vector<1x64xf32>
      %cst_59 = arith.constant 0.000000e+00 : f32
      %98 = vector.broadcast %cst_59 : f32 to vector<1x64xf32>
      %99 = arith.maximumf %97, %98 : vector<1x64xf32>
      %c0_60 = arith.constant 0 : index
      %c0_61 = arith.constant 0 : index
      %100 = vector.load %arg11[%c0_60, %c0_61] : memref<64x1xf32, #tpu.memory_space<vmem>>, vector<64x1xf32>
      %cst_62 = arith.constant dense<0.000000e+00> : vector<1x1xf32>
      %101 = tpu.matmul %99, %100, %cst_62 {dimension_numbers = #tpu.dot_dimension_numbers<[1], [0], [0], [1], [0, 0, 1, 1], [], []>} : vector<1x64xf32>, vector<64x1xf32>, vector<1x1xf32> -> vector<1x1xf32>
      %c0_63 = arith.constant 0 : index
      %c0_64 = arith.constant 0 : index
      %c0_65 = arith.constant 0 : index
      %102 = vector.load %arg12[%c0_63, %c0_64, %c0_65] : memref<1x1x1xf32, #tpu.memory_space<vmem>>, vector<1x1x1xf32>
      %103 = vector.shape_cast %102 : vector<1x1x1xf32> to vector<1x1xf32>
      %104 = vector.shape_cast %101 : vector<1x1xf32> to vector<1x1x1xf32>
      tpu.vector_store %arg12[%c0_63, %c0_64, %c0_65], %104 {strides = array<i32>} : memref<1x1x1xf32, #tpu.memory_space<vmem>>, vector<1x1x1xf32>,
    } else {
    }
    return
  }
  func.func @transform_0(%arg0: i32, %arg1: i32) -> (i32, i32, i32) {
    %c0_i32 = arith.constant 0 : i32
    %c0_i32_0 = arith.constant 0 : i32
    return %arg0, %arg1, %c0_i32 : i32, i32, i32
  }
  func.func @transform_1(%arg0: i32, %arg1: i32) -> (i32, i32) {
    %c0_i32 = arith.constant 0 : i32
    %c0_i32_0 = arith.constant 0 : i32
    %c0_i32_1 = arith.constant 0 : i32
    return %c0_i32, %c0_i32_0 : i32, i32
  }
  func.func @transform_2(%arg0: i32, %arg1: i32) -> (i32, i32) {
    %c0_i32 = arith.constant 0 : i32
    %c0_i32_0 = arith.constant 0 : i32
    %c0_i32_1 = arith.constant 0 : i32
    return %c0_i32, %c0_i32_0 : i32, i32
  }
  func.func @transform_3(%arg0: i32, %arg1: i32) -> (i32, i32) {
    %c0_i32 = arith.constant 0 : i32
    %c0_i32_0 = arith.constant 0 : i32
    %c0_i32_1 = arith.constant 0 : i32
    return %c0_i32, %c0_i32_0 : i32, i32
  }
  func.func @transform_4(%arg0: i32, %arg1: i32) -> (i32, i32) {
    %c0_i32 = arith.constant 0 : i32
    %c0_i32_0 = arith.constant 0 : i32
    %c0_i32_1 = arith.constant 0 : i32
    return %c0_i32, %c0_i32_0 : i32, i32
  }
  func.func @transform_5(%arg0: i32, %arg1: i32) -> (i32, i32) {
    %c0_i32 = arith.constant 0 : i32
    %c0_i32_0 = arith.constant 0 : i32
    %c0_i32_1 = arith.constant 0 : i32
    return %c0_i32, %c0_i32_0 : i32, i32
  }
  func.func @transform_6(%arg0: i32, %arg1: i32) -> (i32, i32) {
    %c0_i32 = arith.constant 0 : i32
    %c0_i32_0 = arith.constant 0 : i32
    %c0_i32_1 = arith.constant 0 : i32
    return %c0_i32, %c0_i32_0 : i32, i32
  }
  func.func @transform_7(%arg0: i32, %arg1: i32) -> (i32, i32) {
    %c0_i32 = arith.constant 0 : i32
    %c0_i32_0 = arith.constant 0 : i32
    %c0_i32_1 = arith.constant 0 : i32
    return %c0_i32, %c0_i32_0 : i32, i32
  }
  func.func @transform_8(%arg0: i32, %arg1: i32) -> (i32, i32) {
    %c0_i32 = arith.constant 0 : i32
    %c0_i32_0 = arith.constant 0 : i32
    %c0_i32_1 = arith.constant 0 : i32
    return %c0_i32, %c0_i32_0 : i32, i32
  }
  func.func @transform_9(%arg0: i32, %arg1: i32) -> (i32, i32) {
    %c0_i32 = arith.constant 0 : i32
    %c0_i32_0 = arith.constant 0 : i32
    %c0_i32_1 = arith.constant 0 : i32
    return %c0_i32, %c0_i32_0 : i32, i32
  }
  func.func @transform_10(%arg0: i32, %arg1: i32) -> (i32, i32, i32) {
    %c0_i32 = arith.constant 0 : i32
    %c0_i32_0 = arith.constant 0 : i32
    %c0_i32_1 = arith.constant 0 : i32
    return %arg0, %c0_i32, %c0_i32_0 : i32, i32, i32
  }
  func.func @transform_11(%arg0: i32, %arg1: i32) -> (i32, i32, i32) {
    %c0_i32 = arith.constant 0 : i32
    %c0_i32_0 = arith.constant 0 : i32
    %c0_i32_1 = arith.constant 0 : i32
    return %arg0, %c0_i32, %c0_i32_0 : i32, i32, i32
  }
}

</mosaic_0001>

<bundles_post_ra>
// kernel: tpu_custom_call.1
= control target key start
LH: loop header
LB: loop body
LE: loop exit
PB: predicated region body
PF: predicated region fallthrough
CT: control target
= control target key end

     0   :  { %s1762_s0 = inlined_call_operand.vmem [shape: f32[2,24,32], index: 0, kind: input, shape index: {}]   ;;  %s1763_s1 = inlined_call_operand.hbm [shape: f32[32,128], index: 1, kind: input, shape index: {}]   ;;  %s1764_s2 = inlined_call_operand.vmem [shape: f32[1,128], index: 2, kind: input, shape index: {}]   ;;  %s1765_s3 = inlined_call_operand.hbm [shape: f32[128,256], index: 3, kind: input, shape index: {}]   ;;  %s1766_s4 = inlined_call_operand.vmem [shape: f32[1,256], index: 4, kind: input, shape index: {}]   ;;  %s1767_s5 = inlined_call_operand.vmem [shape: f32[1,128], index: 5, kind: input, shape index: {}]   ;;  %s1768_s6 = inlined_call_operand.<no memory space> [shape: f32[1,1], index: 6, kind: input, shape index: {}]   ;;  %s1769_s7 = inlined_call_operand.vmem [shape: f32[128,128], index: 7, kind: input, shape index: {}]   ;;  %s1770_s8 = inlined_call_operand.vmem [shape: f32[128,64], index: 8, kind: input, shape index: {}]   ;;  %s1771_s9 = inlined_call_operand.vmem [shape: f32[64,1], index: 9, kind: input, shape index: {}]   ;;  %s1772_s10 = inlined_call_operand.vmem [shape: f32[2,1,1], index: 10, kind: output, shape index: {0}]   ;;  %s1773_s11 = inlined_call_operand.hbm [shape: f32[2,2,16], index: 11, kind: output, shape index: {1}]  }
   0x1   :  { %v17_v0 = vstv %s1768_s6 }
   0x2   :  { %18 = vst [vmem:[#allocation5] sm:$0x1] %v17_v0 }
   0x3   :  { %19 = vsyncpa [#allocation7], 0 }
   0x4   :  { %20 = vsyncpa [#allocation10], 0 }
   0x5   :  { %21 = vsyncpa [#allocation8], 0 }
   0x6   :  { %23 = vsyncpa [#allocation8 + $0x1], 0  ;;  %s1432_s19 = smov 0   ;;  %s1434_s20 = smov 0  }
   0x7   :  { %s1436_s21 = smov 0   ;;  %s1438_s22 = smov 0  }
   0x8   :  { %s1440_s23 = smov 0   ;;  %s1442_s24 = smov 0  }
   0x9   :  { %s1444_s25 = smov 0   ;;  %s1446_s6 = smov 0  }
   0xa LB: > { %1781 = sst [smem:[#allocation15_spill]] %s1329_s19  ;;  %s1043_s26 = sadd.s32 4294967295, %s1357_s6   ;;  %s1357_s6 = sphi %s1446_s6, %s29_s6   ;;  %s1353_s25 = sphi %s1444_s25, %s1798_s25   ;;  %s1349_s24 = sphi %s1442_s24, %s1797_s24   ;;  %s1345_s23 = sphi %s1440_s23, %s1796_s23   ;;  %s1341_s22 = sphi %s1438_s22, %s1795_s22   ;;  %s1337_s21 = sphi %s1436_s21, %s1801_s21   ;;  %s1333_s20 = sphi %s1434_s20, %s1800_s20   ;;  %s1329_s19 = sphi %s1432_s19, %s1799_s19  }
   0xb   : > { %1782 = sst [smem:[#allocation16_spill]] %s1349_s24  ;;  %s1044_s27 = sadd.s32 4294967294, %s1357_s6  }
   0xc   : > { %1783 = sst [smem:[#allocation17_spill]] %s1353_s25  ;;  %s38_s28 = sadd.s32 1, %s1349_s24 }
   0xd   : > { %1784 = sst [smem:[#allocation18_spill]] %s1357_s6  ;;  %s41_s29 = sadd.s32 1, %s1353_s25 }
   0xe   : > { %p39_p0 = scmp.ge.s32.totalorder %s38_s28, 2  ;;  %s291_s30 = sadd.s32 1, %s1337_s21 }
   0xf   : > { %p301_p1 = scmp.ne.s32.totalorder %s1337_s21, %s1333_s20  ;;  %p302_p2 = scmp.eq.s32.totalorder %s1043_s26, 3 }
  0x10   : > { %s1803_s28 = smov (%p39_p0, %s38_s28), 0  ;;  %s1805_s29 = smov (!%p39_p0, %s41_s29), %s1353_s25 }
  0x11   : > { %1785 = sst [smem:[#allocation19_spill]] %s1803_s28  ;;  %p1482_p3 = por %p302_p2, %p301_p1 }
  0x12   : > { %p307_p4 = scmp.ne.s32.totalorder %s1333_s20, %s1329_s19  ;;  %p43_p5 = scmp.ge.s32.totalorder %s1805_s29, 2 }
  0x13   : > { %p308_p6 = scmp.eq.s32.totalorder %s1044_s27, 3  ;;  %p1045_p7 = scmp.ge.s32.totalorder %s1357_s6, 1 }
  0x14   : > { %p315_p8 = scmp.lt.s32.totalorder %s1357_s6, 5  ;;  %s1807_s29 = smov (%p43_p5, %s1805_s29), 0 }
  0x15   : > { %1787 = sst [smem:[#allocation20_spill]] %s1807_s29  ;;  %p1492_p9 = por %p308_p6, %p307_p4 }
  0x16   : > { %p1496_p10 = pnand %p1045_p7, %p315_p8  ;;  %s288_s15 = ssub.s32 %s1353_s25, %s1807_s29 }
  0x17   : > { %s1788_s13 = scalar_select %p1492_p9, 1, 0 }
  0x18   : > { %p289_p11 = scmp.eq.s32.totalorder %s288_s15, 0  ;;  %p1079_p12 = pneg %p1496_p10 }
  0x19   : > { %1789 = sst [smem:[#allocation21_spill]] %s1788_s13  ;;  %p1504_p13 = scmp.eq.s32.totalorder %s1043_s26, 0 }
  0x1a   : > { %s326_s27 = sshll.u32 %s1763_s1, 4  ;;  %s1359_s24 = smov [#allocation6]   ;;  %s327_s27 = int_to_ptr.hbm [resolvable:$true] %s326_s27 }
  0x1b   : > { %s1512_s28 = scalar_select %p289_p11, %s1337_s21, %s291_s30  }
  0x1c   : > { %s328_s13 = sshll.u32 %s1359_s24, 4  ;;  %p1080_p0 = pnand %p1504_p13, %p1079_p12  ;;  %s329_s13 = int_to_ptr.vmem [resolvable:$true] %s328_s13 }
  0x1d   : > { %s1360_s15 = smov 128   ;;  %s1361_s29 = smov 8  }
  0x1e   : > { %1082 = dma.hbm_to_vmem [thread:$0]  (!%p1080_p0), %s327_s27, 512, %s329_s13, [#allocation7], %s1360_s15, %s1360_s15, %s1361_s29  }
  0x1f   : > { %s343_s19 = sshll.u32 %s1765_s3, 4  ;;  %s1362_s6 = smov [#allocation9]   ;;  %s344_s19 = int_to_ptr.hbm [resolvable:$true] %s343_s19 }
  0x20   : > { %s345_s17 = sshll.u32 %s1362_s6, 4  ;;  %s1363_s18 = smov 256   ;;  %s346_s17 = int_to_ptr.vmem [resolvable:$true] %s345_s17 }
  0x21   : > { %s1364_s30 = smov 16   ;;  %400 = sbr.rel (%p1496_p10) target bundleno = 1419 (0x58b), region = 60 }
  0x22   : > { %1085 = dma.hbm_to_vmem [thread:$0]  (!%p1080_p0), %s344_s19, 4096, %s346_s17, [#allocation10], %s1363_s18, %s1363_s18, %s1364_s30  }
  0x26   : > { %1316 = dma.done.wait (%p1504_p13), [#allocation7], 512  }
  0x27   : > { %1318 = vsyncadd (%p1504_p13), [#allocation7], 4294966784 }
  0x28   : > { %1320 = dma.done.wait (%p1504_p13), [#allocation10], 4096  }
  0x29   : > { %1322 = vsyncadd (%p1504_p13), [#allocation10], 4294963200  ;;  %s454_s19 = sand.u32 1, %s1333_s20   ;;  %s1053_s24 = sshll.u32 %s1341_s22, 1 }
  0x2a   : > { %s1052_s25 = sshll.u32 %s454_s19, 1  ;;  %p462_p1 = scmp.lt.s32.totalorder %s1345_s23, 1 }
  0x2b   : > { %p464_p2 = scmp.lt.s32.totalorder %s1053_s24, 2  ;;  %s1547_s30 = scalar_lea.vmem [#allocation11], %s1052_s25 }
  0x2c   : > { %s1535_s6 = scalar_select %p462_p1, %s1345_s23, 1 }
  0x2d   : > { %s1809_s24 = smov (!%p464_p2, %s1053_s24), 2  ;;  %p1055_p4 = scmp.ne.s32.totalorder %s1341_s22, 0 }
  0x2e   : > { %s1068_s29 = smul.u32 3, %s1535_s6  ;;  %s477_s16 = scalar_lea.vmem %s1772_s10, %s1535_s6 }
  0x2f   : > { %481 = sbr.rel (%p1055_p4) target bundleno = 56 (0x38), region = 72 }
  0x30   : > { %s467_s27 = sadd.s32 %s1068_s29, %s1809_s24 }
  0x31   : > { %s1054_s15 = sshll.u32 %s467_s27, 3 }
  0x32   : > { %s1545_s18 = scalar_lea.vmem %s1762_s0, %s1054_s15 }
  0x34   : > { %vm482_vm0 = vcmask 0   ;;  %v1365_v1 = vmov -1e+30   ;;  %v1366_v2 = vmov 0.0  }
  0x35   : > { %483 = vst.msk [vmem:[#allocation2] sm:$0x1] %vm482_vm0, %v1365_v1 }
  0x36   : > { %484 = vst.msk [vmem:[#allocation3] sm:$0x1] %vm482_vm0, %v1366_v2 }
  0x37   : > { %485 = vst [vmem:[#allocation4] sm:$0x1] %v1366_v2 }
  0x38 PF: > { %v506_v3 = vld [vmem:[#allocation6 + $0x18] sm:$0xff]  ;;  %v505_v4 = vld [vmem:[#allocation6 + $0x10] sm:$0xff]  ;;  %v488_v5 = vlaneseq  ;;  %s1056_s24 = sshll.u32 %s1341_s22, 4  ;;  %v504_v6 = vld [vmem:[#allocation6 + $0x8] sm:$0xff]  ;;  %vm511_vm1 = vcmask 261120   ;;  %v1367_v2 = vmov 0   ;;  %s700_s26 = scalar_lea.vmem %s1547_s30, %s1341_s22 [#allocation11] }
  0x39   : > { %530 = vmatpush.msra.mxu0 %v506_v3  ;;  %v1551_v7 = vstv %s1056_s24  ;;  %v571_v9 = vld [vmem:[#allocation9 + $0xf0] sm:$0xff]  ;;  %v572_v10 = vld [vmem:[#allocation9 + $0xf8] sm:$0xff]  ;;  %v569_v11 = vld [vmem:[#allocation9 + $0xe0] sm:$0xff]  ;;  %1169 = vset.pattern.permute.xlu0 %v1367_v2  ;;  %vm701_vm13 = vcmask 122880   ;;  %vm726_vm14 = vcmask 0   ;;  %vm736_vm15 = vcmask 130048  }
  0x3a   : > { %v489_v8 = vshrl.u32 %v488_v5, 7  ;;  %579 = vmatpush.msra.mxu1 %v571_v9  ;;  %v570_v12 = vld [vmem:[#allocation9 + $0xe8] sm:$0xff]  ;;  %v503_v13 = vld [vmem:[#allocation6] sm:$0xff]  ;;  %602 = vmatpush.msra.mxu2 %v572_v10  ;;  %v567_v17 = vld [vmem:[#allocation9 + $0xd0] sm:$0xff]  ;;  %p1062_p5 = scmp.ne.s32.totalorder %s1341_s22, 1 }
  0x3b   : > { %531 = vmatpush.msra.mxu0 %v505_v4  ;;  %v486_v14 = vld [vmem:[%s1545_s18] sm:$0xff]  ;;  %v566_v22 = vld [vmem:[#allocation9 + $0xc8] sm:$0xff]  ;;  %v563_v23 = vld [vmem:[#allocation9 + $0xb0] sm:$0xff]  ;;  %1170 = vset.pattern.permute.xlu1 %v1367_v2 }
  0x3c   : > { %v493_v15 = vadd.s32 %v1551_v7, %v489_v8  ;;  %v490_v16 = vadd.s32 8, %v489_v8  ;;  %580 = vmatpush.msra.mxu1 %v569_v11  ;;  %v568_v18 = vld [vmem:[#allocation9 + $0xd8] sm:$0xff]  ;;  %603 = vmatpush.msra.mxu2 %v570_v12  ;;  %v565_v20 = vld [vmem:[#allocation9 + $0xc0] sm:$0xff]  ;;  %v562_v27 = vld [vmem:[#allocation9 + $0xa8] sm:$0xff] }
  0x3d   : > { %532 = vmatpush.msra.mxu0 %v504_v6  ;;  %v564_v24 = vld [vmem:[#allocation9 + $0xb8] sm:$0xff]  ;;  %v487_v25 = vld [vmem:[%s1545_s18 + $0x8] sm:$0xff]  ;;  %v559_v28 = vld [vmem:[#allocation9 + $0x90] sm:$0xff] }
  0x3e   : > { %vm495_vm2 = vcmp.lt.s32.totalorder %v493_v15, 24  ;;  %v494_v19 = vadd.s32 %v1551_v7, %v490_v16  ;;  %581 = vmatpush.msra.mxu1 %v567_v17  ;;  %604 = vmatpush.msra.mxu2 %v568_v18  ;;  %v561_v26 = vld [vmem:[#allocation9 + $0xa0] sm:$0xff]  ;;  %v560_v30 = vld [vmem:[#allocation9 + $0x98] sm:$0xff]  ;;  %v558_v32 = vld [vmem:[#allocation9 + $0x88] sm:$0xff] }
  0x3f   : > { %533 = vmatpush.msra.mxu0 %v503_v13  ;;  %v501_v21 = vsel %vm495_vm2, %v486_v14, 0.0  ;;  %v557_v31 = vld [vmem:[#allocation9 + $0x80] sm:$0xff]  ;;  %v555_v33 = vld [vmem:[#allocation9 + $0x70] sm:$0xff]  ;;  %v556_v34 = vld [vmem:[#allocation9 + $0x78] sm:$0xff] }
  0x40   : > { %1057 = vmatmul.msk.f32.vlgmr.msra.gmra.mxu0 %vm511_vm1, %v501_v21  ;;  %582 = vmatpush.msra.mxu1 %v565_v20  ;;  %vm496_vm3 = vcmp.lt.s32.totalorder %v494_v19, 24  ;;  %v553_v35 = vld [vmem:[#allocation9 + $0x60] sm:$0xff]  ;;  %v554_v36 = vld [vmem:[#allocation9 + $0x68] sm:$0xff]  ;;  %v551_v37 = vld [vmem:[#allocation9 + $0x50] sm:$0xff] }
  0x41   : > { %605 = vmatpush.msra.mxu2 %v566_v22  ;;  %v502_v29 = vsel %vm496_vm3, %v487_v25, 0.0  ;;  %v552_v38 = vld [vmem:[#allocation9 + $0x58] sm:$0xff]  ;;  %v549_v39 = vld [vmem:[#allocation9 + $0x40] sm:$0xff]  ;;  %v550_v40 = vld [vmem:[#allocation9 + $0x48] sm:$0xff] }
  0x42   : > { %583 = vmatpush.msra.mxu1 %v563_v23  ;;  %v547_v41 = vld [vmem:[#allocation9 + $0x30] sm:$0xff]  ;;  %v548_v42 = vld [vmem:[#allocation9 + $0x38] sm:$0xff]  ;;  %v545_v43 = vld [vmem:[#allocation9 + $0x20] sm:$0xff] }
  0x43   : > { %606 = vmatpush.msra.mxu2 %v564_v24  ;;  %v546_v44 = vld [vmem:[#allocation9 + $0x28] sm:$0xff]  ;;  %v543_v45 = vld [vmem:[#allocation9 + $0x10] sm:$0xff]  ;;  %v544_v46 = vld [vmem:[#allocation9 + $0x18] sm:$0xff] }
  0x44   : > { %584 = vmatpush.msra.mxu1 %v561_v26  ;;  %v541_v47 = vld [vmem:[#allocation9] sm:$0xff]  ;;  %v542_v48 = vld [vmem:[#allocation9 + $0x8] sm:$0xff]  ;;  %v1171_v49 = vld [vmem:[%s1764_s2] ss:$0 sm:$0xff] }
  0x45   : > { %607 = vmatpush.msra.mxu2 %v562_v27  ;;  %v573_v54 = vld [vmem:[%s1766_s4] sm:$0x3]  ;;  %v668_v1 = vld [vmem:[#allocation5] sm:$0x1] }
  0x46   : > { %585 = vmatpush.msra.mxu1 %v559_v28  ;;  %v576_v55 = vperm.slane %v573_v54, 1  ;;  %671 = vperm.xlu0 %1169, %v668_v1   ;;  %v575_v11 = vperm.slane %v573_v54, 0  ;;  %v720_v54 = vld [vmem:[#allocation3] sm:$0x1] }
  0x47   : > { %608 = vmatpush.msra.mxu2 %v560_v30 }
  0x48   : > { %1058 = vmatmul.msk.f32.gmra.mxu0 %vm511_vm1, %v502_v29  ;;  %586 = vmatpush.msra.mxu1 %v557_v31 }
  0x49   : > { %609 = vmatpush.msra.mxu2 %v558_v32 }
  0x4a   : > { %587 = vmatpush.msra.mxu1 %v555_v33 }
  0x4b   : > { %610 = vmatpush.msra.mxu2 %v556_v34 }
  0x4c   : > { %588 = vmatpush.msra.mxu1 %v553_v35  ;;  %v667_v35 = vld [vmem:[%s1767_s5] sm:$0x1] }
  0x4d   : > { %611 = vmatpush.msra.mxu2 %v554_v36  ;;  %v696_v36 = vand.u32 127, %v488_v5 }
  0x4e   : > { %589 = vmatpush.msra.mxu1 %v551_v37 }
  0x4f   : > { %612 = vmatpush.msra.mxu2 %v552_v38  ;;  %v697_v38 = vadd.s32 %v696_v36, %v1551_v7 }
  0x50   : > { %590 = vmatpush.msra.mxu1 %v549_v39 }
  0x51   : > { %613 = vmatpush.msra.mxu2 %v550_v40  ;;  %vm698_vm12 = vcmp.lt.s32.totalorder %v697_v38, 24 }
  0x52   : > { %591 = vmatpush.msra.mxu1 %v547_v41 }
  0x53   : > { %614 = vmatpush.msra.mxu2 %v548_v42 }
  0x54   : > { %592 = vmatpush.msra.mxu1 %v545_v43 }
  0x55   : > { %615 = vmatpush.msra.mxu2 %v546_v44  ;;  %v703_v44 = vld [vmem:[#allocation2] sm:$0x1] }
  0x56   : > { %593 = vmatpush.msra.mxu1 %v543_v45 }
  0x57   : > { %616 = vmatpush.msra.mxu2 %v544_v46 }
  0x58   : > { %594 = vmatpush.msra.mxu1 %v541_v47 }
  0x59   : > { %617 = vmatpush.msra.mxu2 %v542_v48 }
  0xb8   : > { %v672_v37 = vpop.permute.xlu0 %671 }
  0xb9   : > { %v674_v39 = vperm.slane %v672_v37, 0 }
  0xbd   : > { %v535_v50 = vpop.f32.mrf.mxu0 }
  0xbe   : > { %v1563_v51 = vadd.f32 %v1171_v49, %v535_v50 }
  0xc0   : > { %595 = vmatmul.f32.vlgmr.msra.gmra.mxu1 %v1563_v51  ;;  %618 = vmatmul.f32.vlgmr.msra.gmra.mxu2 %v1563_v51 }
  0xc5   : > { %v538_v52 = vpop.f32.mrf.mxu0 }
  0xc6   : > { %v1567_v53 = vadd.f32 %v1171_v49, %v538_v52 }
  0xc8   : > { %598 = vmatmul.f32.gmra.mxu1 %v1567_v53  ;;  %621 = vmatmul.f32.gmra.mxu2 %v1567_v53 }
 0x13d   : > { %v596_v0 = vpop.f32.mrf.mxu1 }
 0x13e   : > { %v597_v17 = vadd.f32 %v596_v0, %v575_v11 }
 0x143   : > { %v619_v56 = vpop.f32.mrf.mxu2 }
 0x144   : > { %v620_v57 = vadd.f32 %v619_v56, %v576_v55 }
 0x145   : > { %v599_v9 = vpop.f32.mrf.mxu1 }
 0x146   : > { %v1059_v58 = vmul.f32 -1.442695, %v620_v57  ;;  %v600_v13 = vadd.f32 %v599_v9, %v575_v11 }
 0x148   : > { %1172 = vpow2.f32 %v1059_v58 }
 0x14b   : > { %v622_v59 = vpop.f32.mrf.mxu2 }
 0x14c   : > { %v623_v60 = vadd.f32 %v622_v59, %v576_v55 }
 0x14e   : > { %v1173_v61 = vpop.eup %1172  ;;  %v1060_v62 = vmul.f32 -1.442695, %v623_v60  ;;  %v728_v60 = vld [vmem:[#allocation4] sm:$0x1] }
 0x14f   : > { %v633_v63 = vadd.f32 1.0, %v1173_v61 }
 0x150   : > { %1174 = vpow2.f32 %v1060_v62 }
 0x151   : > { %1176 = vrcp.f32 %v633_v63  ;;  %vm640_vm6 = vweird.f32 %v633_v63  ;;  %v646_v22 = vand.u32 2147483648, %v633_v63  ;;  %v644_v24 = vand.u32 2147483647, %v633_v63 }
 0x153   : > { %v647_v30 = vor.u32 1.1754944e-38, %v646_v22  ;;  %vm645_vm11 = vcmp.eq.f32.partialorder %v644_v24, 8.507059e+37 }
 0x156   : > { %v1175_v3 = vpop.eup %1174 }
 0x157   : > { %v1177_v4 = vpop.eup %1176  ;;  %v634_v6 = vadd.f32 1.0, %v1175_v3 }
 0x158   : > { %v636_v8 = vmul.f32 %v1177_v4, %v633_v63  ;;  %vm641_vm4 = vweird.f32 %v1177_v4 }
 0x159   : > { %1178 = vrcp.f32 %v634_v6  ;;  %v661_v18 = vand.u32 2147483648, %v634_v6  ;;  %v659_v20 = vand.u32 2147483647, %v634_v6  ;;  %vm655_vm7 = vweird.f32 %v634_v6  ;;  %vm642_vm8 = vmor %vm640_vm6, %vm641_vm4 }
 0x15a   : > { %v637_v10 = vsub.f32 1.0, %v636_v8  ;;  %1180 = vtanh.f32 %v600_v13 }
 0x15b   : > { %1182 = vtanh.f32 %v597_v17  ;;  %v662_v25 = vor.u32 1.1754944e-38, %v661_v18  ;;  %vm660_vm10 = vcmp.eq.f32.partialorder %v659_v20, 8.507059e+37 }
 0x15c   : > { %v638_v15 = vmul.f32 %v1177_v4, %v637_v10 }
 0x15e   : > { %v639_v21 = vadd.f32 %v1177_v4, %v638_v15 }
 0x15f   : > { %v1179_v12 = vpop.eup %1178 }
 0x160   : > { %v651_v14 = vmul.f32 %v1179_v12, %v634_v6  ;;  %vm656_vm5 = vweird.f32 %v1179_v12  ;;  %v643_v27 = vsel %vm642_vm8, %v1177_v4, %v639_v21  ;;  %v1181_v28 = vpop.eup %1180 }
 0x161   : > { %vm657_vm9 = vmor %vm655_vm7, %vm656_vm5  ;;  %v648_v32 = vsel %vm645_vm11, %v647_v30, %v643_v27  ;;  %v1183_v33 = vpop.eup %1182 }
 0x162   : > { %v652_v16 = vsub.f32 1.0, %v651_v14  ;;  %v665_v34 = vmul.f32 %v1183_v33, %v648_v32 }
 0x164   : > { %v653_v19 = vmul.f32 %v1179_v12, %v652_v16 }
 0x166   : > { %v654_v23 = vadd.f32 %v1179_v12, %v653_v19 }
 0x168   : > { %v658_v26 = vsel %vm657_vm9, %v1179_v12, %v654_v23 }
 0x169   : > { %v663_v29 = vsel %vm660_vm10, %v662_v25, %v658_v26 }
 0x16a   : > { %v666_v31 = vmul.f32 %v1181_v28, %v663_v29 }
 0x16c   : > { %689 = vmatpush.xpose.msra.mxu3 %v666_v31 }
 0x170   : > { %690 = vmatpush.xpose.msra.mxu3 %v665_v34 }
 0x173   : > { %691 = vmatmul.f32.vlgmr.msra.gmra.mxu3 %v667_v35 }
 0x174   : > { %754 = vmatpush.msrb.mxu3 %v1567_v53 }
 0x176   : > { %755 = vmatpush.msrb.mxu3 %v1563_v51 }
 0x1f6   : > { %v692_v40 = vpop.f32.mrf.mxu3 }
 0x1f7   : > { %v693_v41 = vadd.f32 %v692_v40, %v674_v39 }
 0x1f9   : > { %v699_v42 = vsel %vm698_vm12, %v693_v41, -1e+30 }
 0x1fa   : > { %v704_v43 = vsel %vm701_vm13, %v699_v42, -inf  ;;  %702 = vst.msk [vmem:[%s700_s26] sm:$0x1] %vm701_vm13, %v699_v42 }
 0x1fb   : > { %705 = vmax.xlane.f32.xlu0 %v704_v43 }
 0x26e   : > { %v706_v45 = vpop.xlane.xlu0 %705 }
 0x26f   : > { %v707_v46 = vmax.f32 %v703_v44, %v706_v45 }
 0x271   : > { %v708_v5 = vsub.f32 %v703_v44, %v707_v46  ;;  %762 = vst.msk [vmem:[#allocation2] sm:$0x1] %vm726_vm14, %v707_v46  ;;  %713 = vperm.xlu1 %1170, %v707_v46  }
 0x273   : > { %v709_v7 = vmul.f32 1.442695, %v708_v5 }
 0x275   : > { %1184 = vpow2.f32 %v709_v7 }
 0x27b   : > { %v1185_v47 = vpop.eup %1184 }
 0x27c   : > { %731 = vperm.xlu1 %1170, %v1185_v47   ;;  %v721_v55 = vmul.f32 %v1185_v47, %v720_v54 }
 0x2e3   : > { %v714_v48 = vpop.permute.xlu1 %713 }
 0x2e4   : > { %v716_v49 = vperm.slane %v714_v48, 0 }
 0x2e6   : > { %v717_v50 = vsub.f32 %v699_v42, %v716_v49 }
 0x2e8   : > { %v718_v51 = vmul.f32 1.442695, %v717_v50 }
 0x2ea   : > { %1186 = vpow2.f32 %v718_v51 }
 0x2ee   : > { %v732_v58 = vpop.permute.xlu1 %731 }
 0x2ef   : > { %v734_v59 = vperm.slane %v732_v58, 0 }
 0x2f0   : > { %v1187_v52 = vpop.eup %1186 }
 0x2f1   : > { %1061 = vmatmul.msk.f32.vlgmr.msrb.gmra.mxu3 %vm736_vm15, %v1187_v52  ;;  %v722_v53 = vsel %vm701_vm13, %v1187_v52, 0.0  ;;  %v735_v61 = vmul.f32 %v734_v59, %v728_v60 }
 0x2f2   : > { %723 = vadd.xlane.f32.xlu2 %v722_v53 }
 0x365   : > { %v724_v56 = vpop.xlane.xlu2 %723 }
 0x366   : > { %v725_v57 = vadd.f32 %v724_v56, %v721_v55 }
 0x368   : > { %727 = vst.msk [vmem:[#allocation3] sm:$0x1] %vm726_vm14, %v725_v57 }
 0x373   : > { %766 = sbr.rel (%p1062_p5) target bundleno = 1404 (0x57c), region = 76 }
 0x374   : > { %v757_v62 = vpop.f32.mrf.mxu3 }
 0x375   : > { %v760_v63 = vadd.f32 %v757_v62, %v735_v61 }
 0x377   : > { %761 = vst [vmem:[#allocation4] sm:$0x1] %v760_v63 }
 0x378   : > { %v767_v0 = vld [vmem:[#allocation3] sm:$0x1]  ;;  %v811_v1 = vld [vmem:[%s1769_s7 + $0x78] sm:$0xff]  ;;  %v1368_v2 = vmov 0   ;;  %v810_v3 = vld [vmem:[%s1769_s7 + $0x70] sm:$0xff]  ;;  %vm787_vm0 = vcmask 123904  }
 0x379   : > { %1188 = vset.pattern.permute.xlu0 %v1368_v2  ;;  %1191 = vrcp.f32 %v767_v0  ;;  %1189 = vset.pattern.permute.xlu1 %v1368_v2  ;;  %v809_v4 = vld [vmem:[%s1769_s7 + $0x68] sm:$0xff]  ;;  %v808_v6 = vld [vmem:[%s1769_s7 + $0x60] sm:$0xff]  ;;  %v807_v9 = vld [vmem:[%s1769_s7 + $0x58] sm:$0xff]  ;;  %vm878_vm1 = vcmask 523264  }
 0x37a   : > { %812 = vmatpush.msra.mxu0 %v811_v1  ;;  %v806_v11 = vld [vmem:[%s1769_s7 + $0x50] sm:$0xff]  ;;  %v805_v12 = vld [vmem:[%s1769_s7 + $0x48] sm:$0xff]  ;;  %v1190_v13 = vld [vmem:[#allocation2] ss:$0 sm:$0xff] }
 0x37b   : > { %v804_v14 = vld [vmem:[%s1769_s7 + $0x40] sm:$0xff]  ;;  %v803_v15 = vld [vmem:[%s1769_s7 + $0x38] sm:$0xff]  ;;  %v802_v16 = vld [vmem:[%s1769_s7 + $0x30] sm:$0xff] }
 0x37c   : > { %813 = vmatpush.msra.mxu0 %v810_v3  ;;  %v801_v17 = vld [vmem:[%s1769_s7 + $0x28] sm:$0xff]  ;;  %v800_v18 = vld [vmem:[%s1769_s7 + $0x20] sm:$0xff]  ;;  %v799_v19 = vld [vmem:[%s1769_s7 + $0x18] sm:$0xff] }
 0x37d   : > { %v798_v20 = vld [vmem:[%s1769_s7 + $0x10] sm:$0xff]  ;;  %v797_v21 = vld [vmem:[%s1769_s7 + $0x8] sm:$0xff]  ;;  %v796_v22 = vld [vmem:[%s1769_s7] sm:$0xff] }
 0x37e   : > { %814 = vmatpush.msra.mxu0 %v809_v4  ;;  %v848_v23 = vld [vmem:[%s1770_s8 + $0x78] sm:$0xff]  ;;  %v847_v24 = vld [vmem:[%s1770_s8 + $0x70] sm:$0xff]  ;;  %v846_v25 = vld [vmem:[%s1770_s8 + $0x68] sm:$0xff] }
 0x37f   : > { %v1192_v8 = vpop.eup %1191  ;;  %849 = vmatpush.msra.mxu1 %v848_v23  ;;  %v845_v26 = vld [vmem:[%s1770_s8 + $0x60] sm:$0xff]  ;;  %v844_v27 = vld [vmem:[%s1770_s8 + $0x58] sm:$0xff]  ;;  %v843_v28 = vld [vmem:[%s1770_s8 + $0x50] sm:$0xff] }
 0x380   : > { %791 = vperm.xlu0 %1188, %v1192_v8   ;;  %v781_v10 = vperm.slane %v1192_v8, 0  ;;  %815 = vmatpush.msra.mxu0 %v808_v6  ;;  %v789_v30 = vld [vmem:[#allocation4] sm:$0x1]  ;;  %v842_v31 = vld [vmem:[%s1770_s8 + $0x48] sm:$0xff]  ;;  %v840_v35 = vld [vmem:[%s1770_s8 + $0x38] sm:$0xff] }
 0x381   : > { %850 = vmatpush.msra.mxu1 %v847_v24  ;;  %v841_v33 = vld [vmem:[%s1770_s8 + $0x40] sm:$0xff]  ;;  %v839_v37 = vld [vmem:[%s1770_s8 + $0x30] sm:$0xff]  ;;  %v838_v39 = vld [vmem:[%s1770_s8 + $0x28] sm:$0xff] }
 0x382   : > { %783 = vperm.xlu1 %1189, %v781_v10   ;;  %816 = vmatpush.msra.mxu0 %v807_v9  ;;  %v769_v36 = vld [vmem:[%s1547_s30] sm:$0x3]  ;;  %v836_v43 = vld [vmem:[%s1770_s8 + $0x18] sm:$0xff]  ;;  %v835_v44 = vld [vmem:[%s1770_s8 + $0x10] sm:$0xff] }
 0x383   : > { %851 = vmatpush.msra.mxu1 %v846_v25  ;;  %v837_v41 = vld [vmem:[%s1770_s8 + $0x20] sm:$0xff]  ;;  %v834_v7 = vld [vmem:[%s1770_s8 + $0x8] sm:$0xff]  ;;  %v877_v48 = vld [vmem:[%s1771_s9 + $0x38] sm:$0xff] }
 0x384   : > { %817 = vmatpush.msra.mxu0 %v806_v11  ;;  %v833_v47 = vld [vmem:[%s1770_s8] sm:$0xff]  ;;  %v876_v49 = vld [vmem:[%s1771_s9 + $0x30] sm:$0xff]  ;;  %890 = vmatpush.msra.mxu2 %v877_v48  ;;  %v875_v50 = vld [vmem:[%s1771_s9 + $0x28] sm:$0xff] }
 0x385   : > { %852 = vmatpush.msra.mxu1 %v845_v26  ;;  %v874_v51 = vld [vmem:[%s1771_s9 + $0x20] sm:$0xff]  ;;  %v873_v52 = vld [vmem:[%s1771_s9 + $0x18] sm:$0xff]  ;;  %v872_v53 = vld [vmem:[%s1771_s9 + $0x10] sm:$0xff] }
 0x386   : > { %818 = vmatpush.msra.mxu0 %v805_v12  ;;  %891 = vmatpush.msra.mxu2 %v876_v49  ;;  %v871_v56 = vld [vmem:[%s1771_s9 + $0x8] sm:$0xff]  ;;  %v870_v57 = vld [vmem:[%s1771_s9] sm:$0xff] }
 0x387   : > { %853 = vmatpush.msra.mxu1 %v844_v27 }
 0x388   : > { %774 = vperm.xlu0 %1188, %v1190_v13   ;;  %819 = vmatpush.msra.mxu0 %v804_v14 }
 0x389   : > { %854 = vmatpush.msra.mxu1 %v843_v28  ;;  %892 = vmatpush.msra.mxu2 %v875_v50 }
 0x38a   : > { %820 = vmatpush.msra.mxu0 %v803_v15 }
 0x38b   : > { %855 = vmatpush.msra.mxu1 %v842_v31  ;;  %893 = vmatpush.msra.mxu2 %v874_v51 }
 0x38c   : > { %821 = vmatpush.msra.mxu0 %v802_v16 }
 0x38d   : > { %856 = vmatpush.msra.mxu1 %v841_v33  ;;  %894 = vmatpush.msra.mxu2 %v873_v52 }
 0x38e   : > { %822 = vmatpush.msra.mxu0 %v801_v17 }
 0x38f   : > { %857 = vmatpush.msra.mxu1 %v840_v35  ;;  %895 = vmatpush.msra.mxu2 %v872_v53 }
 0x390   : > { %823 = vmatpush.msra.mxu0 %v800_v18 }
 0x391   : > { %858 = vmatpush.msra.mxu1 %v839_v37  ;;  %896 = vmatpush.msra.mxu2 %v871_v56 }
 0x392   : > { %824 = vmatpush.msra.mxu0 %v799_v19 }
 0x393   : > { %859 = vmatpush.msra.mxu1 %v838_v39  ;;  %897 = vmatpush.msra.mxu2 %v870_v57 }
 0x394   : > { %825 = vmatpush.msra.mxu0 %v798_v20 }
 0x395   : > { %860 = vmatpush.msra.mxu1 %v837_v41 }
 0x396   : > { %826 = vmatpush.msra.mxu0 %v797_v21 }
 0x397   : > { %861 = vmatpush.msra.mxu1 %v836_v43 }
 0x398   : > { %827 = vmatpush.msra.mxu0 %v796_v22 }
 0x399   : > { %862 = vmatpush.msra.mxu1 %v835_v44 }
 0x39b   : > { %863 = vmatpush.msra.mxu1 %v834_v7 }
 0x39d   : > { %864 = vmatpush.msra.mxu1 %v833_v47 }
 0x3f2   : > { %v792_v29 = vpop.permute.xlu0 %791 }
 0x3f3   : > { %v794_v32 = vperm.slane %v792_v29, 0 }
 0x3f4   : > { %v784_v45 = vpop.permute.xlu1 %783 }
 0x3f5   : > { %v795_v34 = vmul.f32 %v794_v32, %v789_v30 }
 0x3f7   : > { %828 = vmatmul.f32.vlgmr.msra.gmra.mxu0 %v795_v34 }
 0x3fa   : > { %v775_v38 = vpop.permute.xlu0 %774 }
 0x3fb   : > { %v777_v40 = vsub.f32 %v769_v36, %v775_v38 }
 0x3fd   : > { %v778_v42 = vmul.f32 1.442695, %v777_v40 }
 0x3ff   : > { %1193 = vpow2.f32 %v778_v42 }
 0x405   : > { %v1194_v46 = vpop.eup %1193 }
 0x406   : > { %v786_v5 = vmul.f32 %v1194_v46, %v784_v45 }
 0x408   : > { %788 = vst.msk [vmem:[%s1547_s30] sm:$0x3] %vm787_vm0, %v786_v5 }
 0x474   : > { %v829_v54 = vpop.f32.mrf.mxu0 }
 0x475   : > { %v832_v55 = vmax.f32 %v829_v54, 0.0 }
 0x477   : > { %865 = vmatmul.f32.vlgmr.msra.gmra.mxu1 %v832_v55 }
 0x4f4   : > { %v866_v58 = vpop.f32.mrf.mxu1 }
 0x4f5   : > { %v869_v59 = vmax.f32 %v866_v58, 0.0 }
 0x4f7   : > { %1063 = vmatmul.msk.f32.vlgmr.msra.gmra.mxu2 %vm878_vm1, %v869_v59 }
 0x57a   : > { %v899_v60 = vpop.f32.mrf.mxu2 }
 0x57b   : > { %902 = vst.msk [vmem:[%s477_s16] sm:$0x1] %vm726_vm14, %v899_v60 }
 0x57c PF: > { %s1065_s13 = sshll.u32 %s1345_s23, 1  ;;  %s922_s15 = sshll.u32 %s1547_s30, 4  ;;  %s923_s15 = int_to_ptr.vmem [resolvable:$true] %s922_s15 }
 0x57d   : > { %s920_s27 = scalar_lea.hbm %s1773_s11, %s1065_s13  ;;  %s907_s17 = scalar_lea.sflag [#allocation8], %s454_s19 }
 0x57e   : > { %s924_s26 = sshll.u32 %s920_s27, 4  ;;  %s1275_s23 = scalar_lea.hbm %s1773_s11, 4  ;;  %s925_s26 = int_to_ptr.hbm [resolvable:$true] %s924_s26 }
 0x57f   : > { %s1269_s18 = sshra.s32 %s925_s26, 4  ;;  %s1270_s18 = int_to_ptr.hbm [resolvable:$true] %s1269_s18 }
 0x580   : > { %s1271_s6 = scalar_lea.hbm %s1270_s18, 2  ;;  %p1276_p10 = scmp.lt.s32.totalorder %s1270_s18, %s1773_s11 }
 0x581   : > { %p1272_p6 = scmp.ne.s32.totalorder %s1270_s18, %s1271_s6  ;;  %p1277_p11 = scmp.lt.s32.totalorder %s1275_s23, %s1271_s6 }
 0x583   : > { %p1273_p7 = pnand %p1272_p6, %p1482_p3  ;;  %p1278_p12 = por %p1277_p11, %p1276_p10 }
 0x585   : > { %p1274_p8 = pneg %p1273_p7 }
 0x587   : > { %p1279_p13 = pnand %p1278_p12, %p1274_p8 }
 0x589   : > { %1282 = shalt.err (!%p1279_p13)
}
 0x58a   : > { %1077 = dma.vmem_to_hbm [thread:$0]  (%p1482_p3), %s923_s15, 32, %s925_s26, %s907_s17  }
 0x58b PF: > { %s1792_s19 = sld [smem:[#allocation18_spill]] }
 0x58c   : > { %s1793_s30 = sld [smem:[#allocation15_spill]] }
 0x591   : > { %p1094_p0 = scmp.ge.s32.totalorder %s1792_s19, 2 }
 0x592   : > { %s942_s22 = sand.u32 1, %s1793_s30  }
 0x593   : > { %p1087_p1 = pnand %p1094_p0, %p1492_p9  ;;  %s943_s14 = scalar_lea.sflag [#allocation8], %s942_s22 }
 0x595   : > { %p1088_p2 = pneg %p1087_p1 }
 0x597   : > { %1324 = dma.done.wait (%p1088_p2), %s943_s14, 32  }
 0x598   : > { %1326 = vsyncadd (%p1088_p2), %s943_s14, 4294967264  ;;  %s29_s6 = sadd.s32 1, %s1792_s19   ;;  %s1795_s22 = sld [smem:[#allocation16_spill]] }
 0x599   : > { %p26_p4 = scmp.ge.s32.totalorder %s29_s6, 6   ;;  %s1796_s23 = sld [smem:[#allocation17_spill]] }
 0x59a   : > { %s1797_s24 = sld [smem:[#allocation19_spill]]  ;;  %s1799_s19 = smov %s1333_s20 }
 0x59b   : > { %s1798_s25 = sld [smem:[#allocation20_spill]]  ;;  %s1800_s20 = smov %s1337_s21 }
 0x59c   : > { %s1801_s21 = smov %s1512_s28  ;;  %28 = sbr.rel (!%p26_p4) target bundleno = 10 (0xa), region = 125 }
 0x5a1   :  { %949 = vsyncpa [#allocation7], 1 }
 0x5a2   :  { %951 = vsyncpa [#allocation7 + $0x1], 1 }
 0x5a3   :  { %952 = vsyncpa [#allocation10], 1 }
 0x5a4   :  { %953 = vsyncpa [#allocation8], 1 }
 0x5a5   :  { %955 = vsyncpa [#allocation8 + $0x1], 1 }

</bundles_post_ra>
